<compile_context>
chip_gen: v7x
topology: tpu7x:2x2x1
jax: 0.10.0
libtpu: 0.0.40
codegen_flags: <defaults>
</compile_context>

<pallas_src>
import functools
import math

import jax
import jax.numpy as jnp
from jax import lax
from jax.experimental import pallas as pl
from jax.experimental.pallas import tpu as pltpu


def _round_up(x, m):
    return (x + m - 1) // m * m


def _pick_tile(L):
    """Largest 128-aligned tile that divides L exactly, else the full L.

    Using an exact divisor (or the full length) avoids padding K/V rows, which
    would otherwise corrupt the softmax without masking.
    """
    for t in (512, 256, 128):
        if L % t == 0:
            return t
    return L


# ----------------------------- linear projections ----------------------------

def _linear_kernel(x_ref, w_ref, b_ref, o_ref):
    """o = x @ w + b.  Single deep K contraction per tile (no K grid axis)."""
    o_ref[...] = (
        jnp.dot(x_ref[...], w_ref[...], preferred_element_type=jnp.float32)
        + b_ref[...]
    ).astype(o_ref.dtype)


def pallas_linear(x2d, w_t, b_row, *, out_dtype=jnp.bfloat16, tm=512):
    """x2d: (M, K) bf16; w_t: (K, N) bf16 (pre-transposed); b_row: (1, N) f32."""
    M, K = x2d.shape
    Kw, Nout = w_t.shape
    assert Kw == K
    tm = min(tm, _round_up(M, 8))
    Mp = _round_up(M, tm)
    xp = jnp.pad(x2d, ((0, Mp - M), (0, 0))) if Mp != M else x2d

    out = pl.pallas_call(
        _linear_kernel,
        out_shape=jax.ShapeDtypeStruct((Mp, Nout), out_dtype),
        grid=(Mp // tm,),
        in_specs=[
            pl.BlockSpec((tm, K), lambda i: (i, 0)),
            pl.BlockSpec((K, Nout), lambda i: (0, 0)),   # resident weight
            pl.BlockSpec((1, Nout), lambda i: (0, 0)),
        ],
        out_specs=pl.BlockSpec((tm, Nout), lambda i: (i, 0)),
        compiler_params=pltpu.CompilerParams(dimension_semantics=("parallel",)),
    )(xp, w_t, b_row)
    return out[:M] if Mp != M else out


def _qkv_proj_kernel(x_ref, w_ref, b_ref, q_ref, k_ref, v_ref):
    """Fused QKV projection: y = x @ [Wq|Wk|Wv] + b, split into 3 outputs."""
    dim = q_ref.shape[-1]
    y = (
        jnp.dot(x_ref[...], w_ref[...], preferred_element_type=jnp.float32)
        + b_ref[...]
    ).astype(q_ref.dtype)
    q_ref[...] = y[:, :dim]
    k_ref[...] = y[:, dim:2 * dim]
    v_ref[...] = y[:, 2 * dim:3 * dim]


def pallas_qkv_proj(x2d, w_qkv, b_qkv, dim, *, tm=512):
    """x2d: (M, dim) bf16 -> (q, k, v), each (M, dim) bf16 (one fused matmul)."""
    M, K = x2d.shape
    tm = min(tm, _round_up(M, 8))
    Mp = _round_up(M, tm)
    xp = jnp.pad(x2d, ((0, Mp - M), (0, 0))) if Mp != M else x2d

    q, k, v = pl.pallas_call(
        _qkv_proj_kernel,
        out_shape=tuple(
            jax.ShapeDtypeStruct((Mp, dim), jnp.bfloat16) for _ in range(3)),
        grid=(Mp // tm,),
        in_specs=[
            pl.BlockSpec((tm, K), lambda i: (i, 0)),
            pl.BlockSpec((K, 3 * dim), lambda i: (0, 0)),   # resident weight
            pl.BlockSpec((1, 3 * dim), lambda i: (0, 0)),
        ],
        out_specs=[
            pl.BlockSpec((tm, dim), lambda i: (i, 0)),
            pl.BlockSpec((tm, dim), lambda i: (i, 0)),
            pl.BlockSpec((tm, dim), lambda i: (i, 0)),
        ],
        compiler_params=pltpu.CompilerParams(dimension_semantics=("parallel",)),
    )(xp, w_qkv, b_qkv)
    if Mp != M:
        q, k, v = q[:M], k[:M], v[:M]
    return q, k, v


# --------------------- flash attention + fused out-projection ----------------

def _flash_mha_kernel(q_ref, k_ref, v_ref, wo_ref, bo_ref, o_ref,
                      m_sc, l_sc, acc_sc, *, heads):
    """One (batch, q-tile) block per outer step; online softmax over KV tiles.

    q_ref: (1, tq, dim) bf16 (query already scaled by 1/sqrt(hd) via weights)
    k_ref/v_ref: (1, tk, dim) bf16; wo_ref: (dim, dim) bf16; bo_ref: (1, dim) f32
    o_ref: (1, tq, dim) f32 (final, out-projected tile)
    scratch: m_sc/l_sc (heads, tq, 1) f32, acc_sc (heads, tq, hd) f32
    """
    kv = pl.program_id(2)

    @pl.when(kv == 0)
    def _init():
        m_sc[...] = jnp.full_like(m_sc, -jnp.inf)
        l_sc[...] = jnp.zeros_like(l_sc)
        acc_sc[...] = jnp.zeros_like(acc_sc)

    dim = o_ref.shape[-1]
    hd = dim // heads

    for h in range(heads):                       # static unroll; heads is small
        sl = slice(h * hd, (h + 1) * hd)
        qh = q_ref[0, :, sl]                     # (tq, hd) bf16
        kh = k_ref[0, :, sl]                     # (tk, hd) bf16
        vh = v_ref[0, :, sl]                     # (tk, hd) bf16
        # q @ k^T (scale pre-folded into q weights); f32 accumulation.
        s = lax.dot_general(qh, kh, (((1,), (1,)), ((), ())),
                            preferred_element_type=jnp.float32)   # (tq, tk)
        m_prev = m_sc[h]
        m_new = jnp.maximum(m_prev, jnp.max(s, axis=-1, keepdims=True))
        alpha = jnp.exp(m_prev - m_new)          # f32 softmax math (v5e-safe)
        p = jnp.exp(s - m_new)
        l_sc[h] = alpha * l_sc[h] + jnp.sum(p, axis=-1, keepdims=True)
        acc_sc[h] = alpha * acc_sc[h] + jnp.dot(
            p.astype(jnp.bfloat16), vh, preferred_element_type=jnp.float32)
        m_sc[h] = m_new

    @pl.when(kv == pl.num_programs(2) - 1)
    def _finalize():
        # Normalize each head, concatenate into one lane-dense (tq, dim) tile,
        # apply the fused output projection, and store the output block once.
        outs = [acc_sc[h] * pl.reciprocal(l_sc[h], approx=True)
                for h in range(heads)]
        ctx = jnp.concatenate(outs, axis=-1)                      # (tq, dim)
        proj = jnp.dot(ctx.astype(jnp.bfloat16), wo_ref[...],
                       preferred_element_type=jnp.float32) + bo_ref[...]
        o_ref[0] = proj.astype(o_ref.dtype)


def pallas_attention(q, k, v, wo, bo, heads, *, out_dtype=jnp.float32):
    """q: (N, Lq, dim), k/v: (N, Lk, dim) bf16 -> out-projected (N, Lq, dim)."""
    N, Lq, dim = q.shape
    Lk = k.shape[1]
    hd = dim // heads
    tq = _pick_tile(Lq)
    tk = _pick_tile(Lk)
    kernel = functools.partial(_flash_mha_kernel, heads=heads)
    return pl.pallas_call(
        kernel,
        out_shape=jax.ShapeDtypeStruct((N, Lq, dim), out_dtype),
        grid=(N, Lq // tq, Lk // tk),
        in_specs=[
            pl.BlockSpec((1, tq, dim), lambda n, qi, kv: (n, qi, 0)),
            pl.BlockSpec((1, tk, dim), lambda n, qi, kv: (n, kv, 0)),
            pl.BlockSpec((1, tk, dim), lambda n, qi, kv: (n, kv, 0)),
            pl.BlockSpec((dim, dim), lambda n, qi, kv: (0, 0)),     # resident W_out
            pl.BlockSpec((1, dim), lambda n, qi, kv: (0, 0)),
        ],
        out_specs=pl.BlockSpec((1, tq, dim), lambda n, qi, kv: (n, qi, 0)),
        scratch_shapes=[
            pltpu.VMEM((heads, tq, 1), jnp.float32),   # running max
            pltpu.VMEM((heads, tq, 1), jnp.float32),   # running denom
            pltpu.VMEM((heads, tq, hd), jnp.float32),  # running numerator
        ],
        compiler_params=pltpu.CompilerParams(
            dimension_semantics=("parallel", "parallel", "arbitrary")),
    )(q, k, v, wo, bo)


# ----------------------------- module wrapper --------------------------------

def init_params(key, dim):
    """Deterministic PyTorch-convention params (W: [out, in]), mean weights."""
    keys = jax.random.split(key, 8)
    bound = 1.0 / math.sqrt(dim)

    def lin(kw, kb):
        w = jax.random.uniform(kw, (dim, dim), jnp.float32, -bound, bound)
        b = jax.random.uniform(kb, (dim,), jnp.float32, -bound, bound)
        return w, b

    return {
        "query": lin(keys[0], keys[1]),
        "key": lin(keys[2], keys[3]),
        "value": lin(keys[4], keys[5]),
        "out": lin(keys[6], keys[7]),
    }


def prepare_params(params, heads):
    """Pre-transpose to [in, out], pre-cast to bf16, fold the 1/sqrt(hd) scale
    into the query projection, fuse q/k/v, and pre-shape biases to (1, N)."""
    wq, bq = params["query"]
    wk, bk = params["key"]
    wv, bv = params["value"]
    wo, bo = params["out"]
    dim = jnp.asarray(wq).shape[0]
    scale = 1.0 / math.sqrt(dim // heads)

    t = lambda w: jnp.asarray(w, jnp.float32).T.astype(jnp.bfloat16)  # [in, out]
    row = lambda b: jnp.asarray(b, jnp.float32).reshape(1, -1)

    wq_s = jnp.asarray(wq, jnp.float32) * scale
    bq_s = jnp.asarray(bq, jnp.float32) * scale

    return {
        "qkv": (jnp.concatenate([t(wq_s), t(wk), t(wv)], axis=1),        # (dim, 3*dim)
                jnp.concatenate([row(bq_s), row(bk), row(bv)], axis=1)),  # (1, 3*dim)
        "q": (t(wq_s), row(bq_s)),
        "k": (t(wk), row(bk)),
        "v": (t(wv), row(bv)),
        "out": (t(wo), row(bo)),
    }


def multi_head_attention(prepared, values, keys, query, heads):
    """values/keys/query: (N, L, dim) float32 -> (N, Lq, dim) float32."""
    N, _, dim = values.shape
    query_len = query.shape[1]

    if (query is keys) and (keys is values):
        # Self-attention (ViT usage): one fused QKV matmul producing q/k/v.
        x2d = query.reshape(N * query_len, dim).astype(jnp.bfloat16)
        w_qkv, b_qkv = prepared["qkv"]
        q, k, v = pallas_qkv_proj(x2d, w_qkv, b_qkv, dim)
        q = q.reshape(N, query_len, dim)
        k = k.reshape(N, query_len, dim)
        v = v.reshape(N, query_len, dim)
    else:
        q = pallas_linear(query.reshape(-1, dim).astype(jnp.bfloat16),
                          *prepared["q"]).reshape(N, query_len, dim)
        k = pallas_linear(keys.reshape(-1, dim).astype(jnp.bfloat16),
                          *prepared["k"]).reshape(N, keys.shape[1], dim)
        v = pallas_linear(values.reshape(-1, dim).astype(jnp.bfloat16),
                          *prepared["v"]).reshape(N, values.shape[1], dim)

    # Flash attention with the output projection fused into the kernel.
    wo, bo = prepared["out"]
    out = pallas_attention(q, k, v, wo, bo, heads, out_dtype=jnp.float32)
    return out


# --------------------------------- main --------------------------------------

def _reference(params, values, keys, query, heads):
    """Pure-JAX f32 reference for correctness sanity checks."""
    N, _, dim = query.shape
    hd = dim // heads

    def lin(x, w, b):
        return x @ w.T + b

    q = lin(query, *params["query"]).reshape(N, -1, heads, hd).transpose(0, 2, 1, 3)
    k = lin(keys, *params["key"]).reshape(N, -1, heads, hd).transpose(0, 2, 1, 3)
    v = lin(values, *params["value"]).reshape(N, -1, heads, hd).transpose(0, 2, 1, 3)
    energy = jnp.einsum("nhqd,nhkd->nhqk", q, k)
    attn = jax.nn.softmax(energy / math.sqrt(hd), axis=-1)
    out = jnp.einsum("nhqk,nhkd->nhqd", attn, v)
    out = out.transpose(0, 2, 1, 3).reshape(N, -1, dim)
    return lin(out, *params["out"])


if __name__ == "__main__":
    N, L, dim, heads = 2, 8, 32, 4

    root = jax.random.PRNGKey(0)
    k_p, k_x, k_v, k_k, k_q = jax.random.split(root, 5)
    params = init_params(k_p, dim)
    prepared = prepare_params(params, heads)

    # Self-attention path (fused QKV projection), as used by ViT.
    x = jax.random.normal(k_x, (N, L, dim), jnp.float32)
    out_self = jax.block_until_ready(multi_head_attention(prepared, x, x, x, heads))
    ref_self = _reference(params, x, x, x, heads)
    assert out_self.shape == (N, L, dim)
    assert jnp.allclose(out_self, ref_self, atol=5e-2, rtol=5e-2), (
        "self-attn mismatch, max|diff|=%e"
        % float(jnp.max(jnp.abs(out_self - ref_self))))

    # Cross-attention path (distinct values/keys/query): separate projections.
    values = jax.random.normal(k_v, (N, L, dim), jnp.float32)
    keys_in = jax.random.normal(k_k, (N, L, dim), jnp.float32)
    query = jax.random.normal(k_q, (N, L, dim), jnp.float32)
    out_x = jax.block_until_ready(
        multi_head_attention(prepared, values, keys_in, query, heads))
    ref_x = _reference(params, values, keys_in, query, heads)
    assert jnp.allclose(out_x, ref_x, atol=5e-2, rtol=5e-2), (
        "cross-attn mismatch, max|diff|=%e"
        % float(jnp.max(jnp.abs(out_x - ref_x))))

    print("KERNEL_OK")
</pallas_src>

<mosaic_0001>
module attributes {stable_mosaic.version = 11 : i64} {
  func.func @_qkv_proj_kernel(%arg0: i32, %arg1: memref<16x32xbf16, #tpu.memory_space<vmem>>, %arg2: memref<32x96xbf16, #tpu.memory_space<vmem>>, %arg3: memref<1x96xf32, #tpu.memory_space<vmem>>, %arg4: memref<16x32xbf16, #tpu.memory_space<vmem>>, %arg5: memref<16x32xbf16, #tpu.memory_space<vmem>>, %arg6: memref<16x32xbf16, #tpu.memory_space<vmem>>) attributes {dimension_semantics = [#tpu.dimension_semantics<parallel>], iteration_bounds = array<i64: 1>, scalar_prefetch = 0 : i64, scratch_operands = 0 : i64, tpu.core_type = #tpu.core_type<tc>, window_params = [{transform_indices = @transform_0, window_bounds = array<i64: 16, 32>}, {pipeline_mode = #tpu.pipeline_mode<synchronous>, transform_indices = @transform_1, window_bounds = array<i64: 32, 96>}, {pipeline_mode = #tpu.pipeline_mode<synchronous>, transform_indices = @transform_2, window_bounds = array<i64: 1, 96>}, {transform_indices = @transform_3, window_bounds = array<i64: 16, 32>}, {transform_indices = @transform_4, window_bounds = array<i64: 16, 32>}, {transform_indices = @transform_5, window_bounds = array<i64: 16, 32>}]} {
    %c0 = arith.constant 0 : index
    %c0_0 = arith.constant 0 : index
    %0 = vector.load %arg1[%c0, %c0_0] : memref<16x32xbf16, #tpu.memory_space<vmem>>, vector<16x32xbf16>
    %c0_1 = arith.constant 0 : index
    %c0_2 = arith.constant 0 : index
    %1 = vector.load %arg2[%c0_1, %c0_2] : memref<32x96xbf16, #tpu.memory_space<vmem>>, vector<32x96xbf16>
    %cst = arith.constant dense<0.000000e+00> : vector<16x96xf32>
    %2 = tpu.matmul %0, %1, %cst {dimension_numbers = #tpu.dot_dimension_numbers<[1], [0], [0], [1], [0, 0, 1, 1], [], []>} : vector<16x32xbf16>, vector<32x96xbf16>, vector<16x96xf32> -> vector<16x96xf32>
    %c0_3 = arith.constant 0 : index
    %c0_4 = arith.constant 0 : index
    %3 = vector.load %arg3[%c0_3, %c0_4] : memref<1x96xf32, #tpu.memory_space<vmem>>, vector<1x96xf32>
    %4 = vector.broadcast %3 : vector<1x96xf32> to vector<16x96xf32>
    %5 = arith.addf %2, %4 : vector<16x96xf32>
    %6 = arith.truncf %5 : vector<16x96xf32> to vector<16x96xbf16>
    %7 = vector.extract_strided_slice %6 {offsets = [0, 0], sizes = [16, 32], strides = [1, 1]} : vector<16x96xbf16> to vector<16x32xbf16>
    %c0_5 = arith.constant 0 : index
    %c0_6 = arith.constant 0 : index
    %8 = vector.load %arg4[%c0_5, %c0_6] : memref<16x32xbf16, #tpu.memory_space<vmem>>, vector<16x32xbf16>
    tpu.vector_store %arg4[%c0_5, %c0_6], %7 {strides = array<i32>} : memref<16x32xbf16, #tpu.memory_space<vmem>>, vector<16x32xbf16>,
    %9 = vector.extract_strided_slice %6 {offsets = [0, 32], sizes = [16, 32], strides = [1, 1]} : vector<16x96xbf16> to vector<16x32xbf16>
    %c0_7 = arith.constant 0 : index
    %c0_8 = arith.constant 0 : index
    %10 = vector.load %arg5[%c0_7, %c0_8] : memref<16x32xbf16, #tpu.memory_space<vmem>>, vector<16x32xbf16>
    tpu.vector_store %arg5[%c0_7, %c0_8], %9 {strides = array<i32>} : memref<16x32xbf16, #tpu.memory_space<vmem>>, vector<16x32xbf16>,
    %11 = vector.extract_strided_slice %6 {offsets = [0, 64], sizes = [16, 32], strides = [1, 1]} : vector<16x96xbf16> to vector<16x32xbf16>
    %c0_9 = arith.constant 0 : index
    %c0_10 = arith.constant 0 : index
    %12 = vector.load %arg6[%c0_9, %c0_10] : memref<16x32xbf16, #tpu.memory_space<vmem>>, vector<16x32xbf16>
    tpu.vector_store %arg6[%c0_9, %c0_10], %11 {strides = array<i32>} : memref<16x32xbf16, #tpu.memory_space<vmem>>, vector<16x32xbf16>,
    return
  }
  func.func @transform_0(%arg0: i32) -> (i32, i32) {
    %c0_i32 = arith.constant 0 : i32
    %c0_i32_0 = arith.constant 0 : i32
    return %arg0, %c0_i32 : i32, i32
  }
  func.func @transform_1(%arg0: i32) -> (i32, i32) {
    %c0_i32 = arith.constant 0 : i32
    %c0_i32_0 = arith.constant 0 : i32
    %c0_i32_1 = arith.constant 0 : i32
    return %c0_i32, %c0_i32_0 : i32, i32
  }
  func.func @transform_2(%arg0: i32) -> (i32, i32) {
    %c0_i32 = arith.constant 0 : i32
    %c0_i32_0 = arith.constant 0 : i32
    %c0_i32_1 = arith.constant 0 : i32
    return %c0_i32, %c0_i32_0 : i32, i32
  }
  func.func @transform_3(%arg0: i32) -> (i32, i32) {
    %c0_i32 = arith.constant 0 : i32
    %c0_i32_0 = arith.constant 0 : i32
    return %arg0, %c0_i32 : i32, i32
  }
  func.func @transform_4(%arg0: i32) -> (i32, i32) {
    %c0_i32 = arith.constant 0 : i32
    %c0_i32_0 = arith.constant 0 : i32
    return %arg0, %c0_i32 : i32, i32
  }
  func.func @transform_5(%arg0: i32) -> (i32, i32) {
    %c0_i32 = arith.constant 0 : i32
    %c0_i32_0 = arith.constant 0 : i32
    return %arg0, %c0_i32 : i32, i32
  }
}

</mosaic_0001>

<bundles_post_ra>
// kernel: tpu_custom_call.1
= control target key start
LH: loop header
LB: loop body
LE: loop exit
PB: predicated region body
PF: predicated region fallthrough
CT: control target
= control target key end

     0   :  { %11 = vsyncpa [#allocation3], 0  ;;  %s483_s0 = inlined_call_operand.hbm [shape: bf16[16,32], index: 0, kind: input, shape index: {}]   ;;  %s484_s1 = inlined_call_operand.hbm [shape: bf16[32,96], index: 1, kind: input, shape index: {}]   ;;  %s485_s2 = inlined_call_operand.vmem [shape: f32[1,96], index: 2, kind: input, shape index: {}]   ;;  %s486_s3 = inlined_call_operand.hbm [shape: bf16[16,32], index: 3, kind: output, shape index: {0}]   ;;  %s487_s4 = inlined_call_operand.hbm [shape: bf16[16,32], index: 4, kind: output, shape index: {1}]   ;;  %s488_s5 = inlined_call_operand.hbm [shape: bf16[16,32], index: 5, kind: output, shape index: {2}]  }
   0x1   :  { %12 = vsyncpa [#allocation6], 0 }
   0x2   :  { %13 = vsyncpa [#allocation4], 0 }
   0x3   :  { %14 = vsyncpa [#allocation9], 0  ;;  %s350_s18 = smov [#allocation2]   ;;  %s232_s22 = scalar_lea.hbm %s483_s0, 128 }
   0x4   :  { %s20_s19 = sshll.u32 %s350_s18, 4  ;;  %p233_p0 = scmp.ne.s32.totalorder %s483_s0, %s232_s22  ;;  %s21_s19 = int_to_ptr.vmem [resolvable:$true] %s20_s19 }
   0x5   :  { %p236_p1 = scmp.lt.u32.totalorder %s232_s22, %s483_s0 }
   0x7   :  { %p238_p2 = pnand %p236_p1, %p233_p0 }
   0x9   :  { %241 = shalt.err (!%p238_p2)
}
   0xa   :  { %s242_s27 = scalar_lea.vmem %s21_s19, 128  ;;  %p247_p4 = scmp.lt.s32.totalorder %s21_s19, %s21_s19 }
   0xb   :  { %p243_p3 = scmp.ne.s32.totalorder %s21_s19, %s242_s27  ;;  %p248_p5 = scmp.lt.s32.totalorder %s242_s27, %s242_s27 }
   0xd   :  { %p249_p6 = por %p248_p5, %p247_p4 }
   0xf   :  { %p250_p7 = pnand %p249_p6, %p243_p3 }
  0x11   :  { %253 = shalt.err (!%p250_p7)
}
  0x12   :  { %s351_s28 = smov 64   ;;  %s352_s29 = smov 4  }
  0x13   :  { %26 = dma.hbm_to_vmem [thread:$0]  %s483_s0, 128, %s21_s19, [#allocation3], %s351_s28, %s351_s28, %s352_s29  }
  0x14   :  { %s353_s7 = smov [#allocation5]   ;;  %s254_s11 = scalar_lea.hbm %s484_s1, 256 }
  0x15   :  { %s32_s8 = sshll.u32 %s353_s7, 4  ;;  %p255_p8 = scmp.ne.s32.totalorder %s484_s1, %s254_s11  ;;  %s33_s8 = int_to_ptr.vmem [resolvable:$true] %s32_s8 }
  0x16   :  { %p258_p9 = scmp.lt.u32.totalorder %s254_s11, %s484_s1 }
  0x18   :  { %p260_p10 = pnand %p258_p9, %p255_p8 }
  0x1a   :  { %263 = shalt.err (!%p260_p10)
}
  0x1b   :  { %s264_s16 = scalar_lea.vmem %s33_s8, 256  ;;  %p269_p12 = scmp.lt.s32.totalorder %s33_s8, %s33_s8 }
  0x1c   :  { %p265_p11 = scmp.ne.s32.totalorder %s33_s8, %s264_s16  ;;  %p270_p13 = scmp.lt.s32.totalorder %s264_s16, %s264_s16 }
  0x1e   :  { %p271_p0 = por %p270_p13, %p269_p12 }
  0x20   :  { %p272_p1 = pnand %p271_p0, %p265_p11 }
  0x22   :  { %275 = shalt.err (!%p272_p1)
}
  0x23   :  { %38 = dma.hbm_to_vmem [thread:$0]  %s484_s1, 256, %s33_s8, [#allocation6], %s351_s28, %s351_s28, %s352_s29  }
  0x24   :  { %342 = dma.done.wait [#allocation3], 128  }
  0x25   :  { %343 = vsyncadd [#allocation3], 4294967168 }
  0x26   :  { %344 = dma.done.wait [#allocation6], 256  }
  0x27   :  { %345 = vsyncadd [#allocation6], 4294967040  ;;  %v354_v0 = vmov 0.0   ;;  %vm355_vm0 = vmmov 0   ;;  %v229_v1 = vld [vmem:[#allocation5] sm:$0xff]   ;;  %v230_v2 = vld [vmem:[#allocation5 + $0x8] sm:$0xff]  }
  0x28   :  { %211 = vmatprep.subr.bf16.mxu0 %v354_v0  ;;  %215 = vmatprep.mubr.msk.bf16.mxu0 %vm355_vm0, %v354_v0  ;;  %v231_v3 = vld [vmem:[#allocation2] sm:$0xff]   ;;  %vm78_vm1 = vcmask 261120   ;;  %vm131_vm2 = vcmask 257024   ;;  %s356_s1 = smov [#allocation7]   ;;  %s357_s21 = smov 96  }
  0x29   :  { %212 = vmatpush3.bf16.msra.mxu0 %v229_v1  ;;  %v199_v4 = vld [vmem:[%s485_s2] ss:$0 sm:$0xff]  ;;  %s155_s20 = sshll.u32 %s356_s1, 4  ;;  %s156_s20 = int_to_ptr.vmem [resolvable:$true] %s155_s20 }
  0x2a   :  { %213 = vmatprep.subr.bf16.mxu0 %v354_v0  ;;  %s276_s2 = scalar_lea.vmem %s156_s20, 128  ;;  %p281_p3 = scmp.lt.s32.totalorder %s156_s20, %s156_s20 }
  0x2b   :  { %p277_p2 = scmp.ne.s32.totalorder %s156_s20, %s276_s2  ;;  %p282_p4 = scmp.lt.s32.totalorder %s276_s2, %s276_s2 }
  0x2d   :  { %214 = vmatpush3.bf16.msra.mxu0 %v230_v2  ;;  %p283_p5 = por %p282_p4, %p281_p3 }
  0x2f   :  { %p284_p6 = pnand %p283_p5, %p277_p2 }
  0x30   :  { %216 = vmatmul.mubr.msk.bf16.vlgmr.msra.gmra.mrb[0].mxu0 %vm78_vm1, %v231_v3 }
 0x103   :  { %v116_v5 = vpop.f32.mrb[0].mxu0 }
 0x104   :  { %v117_v6 = vadd.f32 %v199_v4, %v116_v5  ;;  %v217_v7 = vpop.f32.mrb[1].mxu0 }
 0x105   :  { %v119_v8 = vpop.f32.mrb[2].mxu0 }
 0x106   :  { %v206_v9 = vpack.c.bf16 %v117_v6, %v117_v6  ;;  %v120_v10 = vadd.f32 %v199_v4, %v119_v8  ;;  %v218_v11 = vpop.f32.mrb[3].mxu0 }
 0x108   :  { %v207_v12 = vpack.c.bf16 %v120_v10, %v120_v10  ;;  %142 = vrot.lane.b32.xlu1 %v206_v9, %s351_s28  ;;  %134 = vrot.lane.b32.xlu0 %v206_v9, %s357_s21  ;;  %132 = vst.msk [vmem:[#allocation7] sm:$0xf] %vm131_vm2, %v206_v9 }
 0x10a   :  { %133 = vst.msk [vmem:[#allocation7 + $0x4] sm:$0xf] %vm131_vm2, %v207_v12 }
 0x10b   :  { %287 = shalt.err (!%p284_p6)
}
 0x10c   :  { %s288_s24 = scalar_lea.hbm %s486_s3, 128 }
 0x10d   :  { %p289_p7 = scmp.ne.s32.totalorder %s486_s3, %s288_s24  ;;  %p292_p8 = scmp.lt.u32.totalorder %s288_s24, %s486_s3 }
 0x10f   :  { %p294_p9 = pnand %p292_p8, %p289_p7 }
 0x111   :  { %297 = shalt.err (!%p294_p9)
}
 0x112   :  { %161 = dma.vmem_to_hbm [thread:$0]  %s156_s20, 128, %s486_s3, [#allocation4], %s351_s28, %s351_s28, %s352_s29  }
 0x113   :  { %144 = vrot.lane.b32.xlu1 %v207_v12, %s351_s28  ;;  %136 = vrot.lane.b32.xlu0 %v207_v12, %s357_s21  ;;  %s358_s8 = smov [#allocation8]   ;;  %s359_s10 = smov [#allocation10]  }
 0x114   :  { %s167_s9 = sshll.u32 %s358_s8, 4  ;;  %s179_s11 = sshll.u32 %s359_s10, 4  ;;  %s168_s9 = int_to_ptr.vmem [resolvable:$true] %s167_s9  ;;  %s444_s11 = int_to_ptr.vmem [resolvable:$true] %s179_s11 }
 0x115   :  { %s298_s3 = scalar_lea.vmem %s168_s9, 128  ;;  %p303_p11 = scmp.lt.s32.totalorder %s168_s9, %s168_s9 }
 0x116   :  { %p299_p10 = scmp.ne.s32.totalorder %s168_s9, %s298_s3  ;;  %p304_p12 = scmp.lt.s32.totalorder %s298_s3, %s298_s3 }
 0x118   :  { %p305_p13 = por %p304_p12, %p303_p11 }
 0x11a   :  { %p306_p0 = pnand %p305_p13, %p299_p10 }
 0x17a   :  { %v143_v13 = vpop.permute.xlu1 %142  ;;  %v135_v14 = vpop.permute.xlu0 %134 }
 0x17b   :  { %148 = vst.msk [vmem:[#allocation10] sm:$0xf] %vm131_vm2, %v143_v13  ;;  %140 = vst.msk [vmem:[#allocation8] sm:$0xf] %vm131_vm2, %v135_v14 }
 0x185   :  { %v145_v15 = vpop.permute.xlu1 %144  ;;  %v137_v16 = vpop.permute.xlu0 %136 }
 0x186   :  { %149 = vst.msk [vmem:[#allocation10 + $0x4] sm:$0xf] %vm131_vm2, %v145_v15  ;;  %141 = vst.msk [vmem:[#allocation8 + $0x4] sm:$0xf] %vm131_vm2, %v137_v16 }
 0x187   :  { %309 = shalt.err (!%p306_p0)
}
 0x188   :  { %s310_s14 = scalar_lea.hbm %s487_s4, 128 }
 0x189   :  { %p311_p1 = scmp.ne.s32.totalorder %s487_s4, %s310_s14  ;;  %p314_p2 = scmp.lt.u32.totalorder %s310_s14, %s487_s4 }
 0x18b   :  { %p316_p3 = pnand %p314_p2, %p311_p1 }
 0x18d   :  { %319 = shalt.err (!%p316_p3)
}
 0x18e   :  { %173 = dma.vmem_to_hbm [thread:$0]  %s168_s9, 128, %s487_s4, [#allocation9], %s351_s28, %s351_s28, %s352_s29  }
 0x18f   :  { %s320_s1 = scalar_lea.vmem %s444_s11, 128  ;;  %p325_p5 = scmp.lt.s32.totalorder %s444_s11, %s444_s11 }
 0x190   :  { %p321_p4 = scmp.ne.s32.totalorder %s444_s11, %s320_s1  ;;  %p326_p6 = scmp.lt.s32.totalorder %s320_s1, %s320_s1 }
 0x192   :  { %p327_p7 = por %p326_p6, %p325_p5 }
 0x194   :  { %p328_p8 = pnand %p327_p7, %p321_p4 }
 0x196   :  { %331 = shalt.err (!%p328_p8)
}
 0x197   :  { %s332_s2 = scalar_lea.hbm %s488_s5, 128 }
 0x198   :  { %p333_p9 = scmp.ne.s32.totalorder %s488_s5, %s332_s2  ;;  %p336_p10 = scmp.lt.u32.totalorder %s332_s2, %s488_s5 }
 0x19a   :  { %p338_p11 = pnand %p336_p10, %p333_p9 }
 0x19c   :  { %341 = shalt.err (!%p338_p11)
}
 0x19d   :  { %185 = dma.vmem_to_hbm [thread:$0]  %s444_s11, 128, %s488_s5, [#allocation9], %s351_s28, %s351_s28, %s352_s29  }
 0x19e   :  { %346 = dma.done.wait [#allocation4], 128  }
 0x19f   :  { %347 = vsyncadd [#allocation4], 4294967168 }
 0x1a0   :  { %348 = dma.done.wait [#allocation9], 256  }
 0x1a1   :  { %349 = vsyncadd [#allocation9], 4294967040 }
 0x1a2   :  { %195 = vsyncpa [#allocation3], 1 }
 0x1a3   :  { %196 = vsyncpa [#allocation6], 1 }
 0x1a4   :  { %197 = vsyncpa [#allocation4], 1 }
 0x1a5   :  { %198 = vsyncpa [#allocation9], 1 }

</bundles_post_ra>
